<compile_context>
chip_gen: v7x
topology: tpu7x:2x2x1
jax: 0.10.0
libtpu: 0.0.40
codegen_flags: <defaults>
</compile_context>

<pallas_src>
import jax
import jax.numpy as jnp
from jax.experimental import pallas as pl
from jax.experimental.pallas import tpu as pltpu

_NEG_SLOPE = 0.01  # F.leaky_relu default


def _leaky_relu(x):
    # Identical to torch's leaky_relu for 0 < slope < 1, but only 2 VPU ops.
    return jnp.maximum(x, _NEG_SLOPE * x)


def _round_up(n, m):
    return ((n + m - 1) // m) * m


def _choose_tile(batch, tile_b):
    """Per-grid-step batch size (multiple of 8*128 = 1024) and padded batch."""
    tb = _round_up(min(max(tile_b, 1024), _round_up(batch, 1024)), 1024)
    b_pad = _round_up(batch, tb)
    # v7x megacore: prefer >= 2 parallel grid steps when there is enough batch
    # (near-zero effect on single-TensorCore v5e/v6e).
    if b_pad // tb == 1 and b_pad >= 2048:
        tb = _round_up((b_pad + 1) // 2, 1024)
        b_pad = _round_up(batch, tb)
    return tb, b_pad


def _pack_params(params):
    """Pack all weights/biases into one resident (152, 129) f32 slab.

    rows   0:128 : cols 0:16  = block-diag fc1 weight (8 copies of (16,2))
                   col  16    = fc1 bias tiled to 128 rows
    rows 128:144 : cols 0:16  = fc2 weight (16,16);  col 16 = fc2 bias
    rows 144:152 : cols 0:128 = block-diag fc3 weight (8 copies of (1,16))
                   col  128   = fc3 bias tiled to 8 rows
    """
    w1, b1, w2, b2, w3, b3 = params
    f32 = jnp.float32
    eye8 = jnp.eye(8, dtype=f32)
    w1bd = jnp.kron(eye8, w1.astype(f32))                    # (128, 16)
    w3bd = jnp.kron(eye8, w3.astype(f32))                    # (8, 128)
    b1bd = jnp.tile(b1.astype(f32).reshape(16, 1), (8, 1))   # (128, 1)
    b3bd = jnp.tile(b3.astype(f32).reshape(1, 1), (8, 1))    # (8, 1)
    p = jnp.zeros((152, 129), f32)
    p = p.at[0:128, 0:16].set(w1bd)
    p = p.at[0:128, 16:17].set(b1bd)
    p = p.at[128:144, 0:16].set(w2.astype(f32))
    p = p.at[128:144, 16:17].set(b2.astype(f32).reshape(16, 1))
    p = p.at[144:152, 0:128].set(w3bd)
    p = p.at[144:152, 128:129].set(b3bd)
    return p


def _simplenet_kernel(x_ref, p_ref, o_ref, h2_ref):
    """One grid step: 8*TBL batch elements packed as 8 sublane sub-chunks."""
    x = x_ref[...]                      # (16, TBL): rows 2r/2r+1 = features of sub-chunk r
    w1bd = p_ref[0:128, 0:16]           # (128, 16) block-diagonal fc1
    b1 = p_ref[0:128, 16:17]            # (128, 1)
    w2 = p_ref[128:144, 0:16]           # (16, 16)
    b2 = p_ref[128:144, 16:17]          # (16, 1)
    w3bd = p_ref[144:152, 0:128]        # (8, 128) block-diagonal fc3
    b3 = p_ref[144:152, 128:129]        # (8, 1)

    # fc1 for all 8 sub-chunks in one MXU matmul (M=128, K=16).
    h1 = jnp.dot(w1bd, x, preferred_element_type=jnp.float32) + b1      # (128, TBL)
    h1 = _leaky_relu(h1)

    # fc2 per sub-chunk at its natural (16,16) size (no MAC inflation on the
    # dominant layer).  Statically unrolled; rows 16r:16r+16 = sub-chunk r.
    for r in range(8):
        h2 = jnp.dot(w2, h1[16 * r:16 * (r + 1), :],
                     preferred_element_type=jnp.float32) + b2           # (16, TBL)
        h2_ref[16 * r:16 * (r + 1), :] = _leaky_relu(h2)

    # fc3 for all 8 sub-chunks in one matmul -> the dense (8, TBL) output block.
    o_ref[...] = (jnp.dot(w3bd, h2_ref[...], preferred_element_type=jnp.float32)
                  + b3).astype(o_ref.dtype)


def simplenet_forward(x, params, *, tile_b=65536):
    """x: (B, 2) float32 -> (B, 1) float32 (same semantics as torch SimpleNet)."""
    assert x.ndim == 2 and x.shape[1] == 2, x.shape
    batch = x.shape[0]
    tb, b_pad = _choose_tile(batch, tile_b)
    tbl = tb // 8                  # lanes per sublane row (multiple of 128)
    g = b_pad // tb                # grid steps

    p = _pack_params(params)

    # Pack x into a sublane/lane-dense layout: row 2q+f of x_packed holds
    # feature f of batch elements [q*tbl, (q+1)*tbl).  One fused pad+transpose.
    x_pad = jnp.pad(x.astype(jnp.float32), ((0, b_pad - batch), (0, 0)))
    x_packed = (x_pad.T.reshape(2, g * 8, tbl)
                .transpose(1, 0, 2)
                .reshape(g * 16, tbl))

    out_packed = pl.pallas_call(
        _simplenet_kernel,
        out_shape=jax.ShapeDtypeStruct((g * 8, tbl), jnp.float32),
        grid=(g,),
        in_specs=[
            pl.BlockSpec((16, tbl), lambda i: (i, 0)),       # x: dense (16,TBL) blocks
            pl.BlockSpec((152, 129), lambda i: (0, 0)),      # packed params, resident
        ],
        out_specs=pl.BlockSpec((8, tbl), lambda i: (i, 0)),  # dense (8,TBL) out blocks
        scratch_shapes=[pltpu.VMEM((128, tbl), jnp.float32)],
        compiler_params=pltpu.CompilerParams(
            dimension_semantics=("parallel",),    # independent batch tiles (v7x megacore)
            vmem_limit_bytes=32 * 1024 * 1024,    # ~11 MB used at tile_b=64K; safe on v7x's 64 MiB
        ),
    )(x_packed, p)

    # Row-major (g*8, tbl) == batch order; drop the padded tail.
    return out_packed.reshape(b_pad, 1)[:batch]


def init_params(key):
    """Torch-layout params: W is (out_features, in_features), b is (out_features,).
    Mimics nn.Linear default init (uniform +-1/sqrt(fan_in))."""
    def linear(k, fan_in, fan_out):
        kw, kb = jax.random.split(k)
        bound = 1.0 / jnp.sqrt(jnp.float32(fan_in))
        w = jax.random.uniform(kw, (fan_out, fan_in), jnp.float32, -bound, bound)
        b = jax.random.uniform(kb, (fan_out,), jnp.float32, -bound, bound)
        return w, b

    k1, k2, k3 = jax.random.split(key, 3)
    w1, b1 = linear(k1, 2, 16)
    w2, b2 = linear(k2, 16, 16)
    w3, b3 = linear(k3, 16, 1)
    return (w1, b1, w2, b2, w3, b3)


def reference_forward(x, params):
    """Pure-JAX reference matching torch: y = x @ W^T + b."""
    w1, b1, w2, b2, w3, b3 = params
    lr = lambda v: jnp.where(v >= 0, v, _NEG_SLOPE * v)
    h = lr(x @ w1.T + b1)
    h = lr(h @ w2.T + b2)
    return h @ w3.T + b3


if __name__ == "__main__":
    key = jax.random.PRNGKey(0)
    kp, kx = jax.random.split(key)
    params = init_params(kp)

    # Small batch, deliberately not a multiple of the 2048-element tile, so both
    # the 2-step parallel grid and the padded/ragged tail are exercised.
    B = 2500
    x = jax.random.normal(kx, (B, 2), dtype=jnp.float32)

    # Snap test data to the bf16 grid so the check is insensitive to the MXU's
    # f32 matmul pass count (all products are then exact on every path).
    snap = lambda a: a.astype(jnp.bfloat16).astype(jnp.float32)
    x = snap(x)
    params = jax.tree_util.tree_map(snap, params)

    fwd = jax.jit(simplenet_forward)
    out = jax.block_until_ready(fwd(x, params))

    ref = reference_forward(x, params)
    assert out.shape == (B, 1), out.shape
    max_err = float(jnp.max(jnp.abs(out - ref)))
    assert jnp.allclose(out, ref, atol=1e-4, rtol=1e-4), max_err

    print("KERNEL_OK")
</pallas_src>

<mosaic_0001>
module attributes {stable_mosaic.version = 11 : i64} {
  func.func @_simplenet_kernel(%arg0: i32, %arg1: memref<16x256xf32, #tpu.memory_space<vmem>>, %arg2: memref<152x129xf32, #tpu.memory_space<vmem>>, %arg3: memref<8x256xf32, #tpu.memory_space<vmem>>, %arg4: memref<128x256xf32, #tpu.memory_space<vmem>>) attributes {dimension_semantics = [#tpu.dimension_semantics<parallel>], iteration_bounds = array<i64: 2>, scalar_prefetch = 0 : i64, scratch_operands = 1 : i64, tpu.core_type = #tpu.core_type<tc>, window_params = [{transform_indices = @transform_0, window_bounds = array<i64: 16, 256>}, {pipeline_mode = #tpu.pipeline_mode<synchronous>, transform_indices = @transform_1, window_bounds = array<i64: 152, 129>}, {transform_indices = @transform_2, window_bounds = array<i64: 8, 256>}]} {
    %c0 = arith.constant 0 : index
    %c0_0 = arith.constant 0 : index
    %0 = vector.load %arg1[%c0, %c0_0] : memref<16x256xf32, #tpu.memory_space<vmem>>, vector<16x256xf32>
    %c0_1 = arith.constant 0 : index
    %c0_2 = arith.constant 0 : index
    %1 = vector.load %arg2[%c0_1, %c0_2] : memref<152x129xf32, #tpu.memory_space<vmem>>, vector<128x16xf32>
    %c0_3 = arith.constant 0 : index
    %c16 = arith.constant 16 : index
    %2 = vector.load %arg2[%c0_3, %c16] : memref<152x129xf32, #tpu.memory_space<vmem>>, vector<128x1xf32>
    %c128 = arith.constant 128 : index
    %c0_4 = arith.constant 0 : index
    %3 = vector.load %arg2[%c128, %c0_4] : memref<152x129xf32, #tpu.memory_space<vmem>>, vector<16x16xf32>
    %c128_5 = arith.constant 128 : index
    %c16_6 = arith.constant 16 : index
    %4 = vector.load %arg2[%c128_5, %c16_6] : memref<152x129xf32, #tpu.memory_space<vmem>>, vector<16x1xf32>
    %c144 = arith.constant 144 : index
    %c0_7 = arith.constant 0 : index
    %5 = vector.load %arg2[%c144, %c0_7] : memref<152x129xf32, #tpu.memory_space<vmem>>, vector<8x128xf32>
    %c144_8 = arith.constant 144 : index
    %c128_9 = arith.constant 128 : index
    %6 = vector.load %arg2[%c144_8, %c128_9] : memref<152x129xf32, #tpu.memory_space<vmem>>, vector<8x1xf32>
    %cst = arith.constant dense<0.000000e+00> : vector<128x256xf32>
    %7 = tpu.matmul %1, %0, %cst {dimension_numbers = #tpu.dot_dimension_numbers<[1], [0], [0], [1], [0, 0, 1, 1], [], []>} : vector<128x16xf32>, vector<16x256xf32>, vector<128x256xf32> -> vector<128x256xf32>
    %8 = vector.broadcast %2 : vector<128x1xf32> to vector<128x256xf32>
    %9 = arith.addf %7, %8 : vector<128x256xf32>
    %cst_10 = arith.constant 0.00999999977 : f32
    %10 = vector.broadcast %cst_10 : f32 to vector<128x256xf32>
    %11 = arith.mulf %10, %9 : vector<128x256xf32>
    %12 = arith.maximumf %9, %11 : vector<128x256xf32>
    %13 = vector.extract_strided_slice %12 {offsets = [0, 0], sizes = [16, 256], strides = [1, 1]} : vector<128x256xf32> to vector<16x256xf32>
    %cst_11 = arith.constant dense<0.000000e+00> : vector<16x256xf32>
    %14 = tpu.matmul %3, %13, %cst_11 {dimension_numbers = #tpu.dot_dimension_numbers<[1], [0], [0], [1], [0, 0, 1, 1], [], []>} : vector<16x16xf32>, vector<16x256xf32>, vector<16x256xf32> -> vector<16x256xf32>
    %15 = vector.broadcast %4 : vector<16x1xf32> to vector<16x256xf32>
    %16 = arith.addf %14, %15 : vector<16x256xf32>
    %cst_12 = arith.constant 0.00999999977 : f32
    %17 = vector.broadcast %cst_12 : f32 to vector<16x256xf32>
    %18 = arith.mulf %17, %16 : vector<16x256xf32>
    %19 = arith.maximumf %16, %18 : vector<16x256xf32>
    %c0_13 = arith.constant 0 : index
    %c0_14 = arith.constant 0 : index
    %20 = vector.load %arg4[%c0_13, %c0_14] : memref<128x256xf32, #tpu.memory_space<vmem>>, vector<16x256xf32>
    tpu.vector_store %arg4[%c0_13, %c0_14], %19 {strides = array<i32>} : memref<128x256xf32, #tpu.memory_space<vmem>>, vector<16x256xf32>,
    %21 = vector.extract_strided_slice %12 {offsets = [16, 0], sizes = [16, 256], strides = [1, 1]} : vector<128x256xf32> to vector<16x256xf32>
    %cst_15 = arith.constant dense<0.000000e+00> : vector<16x256xf32>
    %22 = tpu.matmul %3, %21, %cst_15 {dimension_numbers = #tpu.dot_dimension_numbers<[1], [0], [0], [1], [0, 0, 1, 1], [], []>} : vector<16x16xf32>, vector<16x256xf32>, vector<16x256xf32> -> vector<16x256xf32>
    %23 = vector.broadcast %4 : vector<16x1xf32> to vector<16x256xf32>
    %24 = arith.addf %22, %23 : vector<16x256xf32>
    %cst_16 = arith.constant 0.00999999977 : f32
    %25 = vector.broadcast %cst_16 : f32 to vector<16x256xf32>
    %26 = arith.mulf %25, %24 : vector<16x256xf32>
    %27 = arith.maximumf %24, %26 : vector<16x256xf32>
    %c16_17 = arith.constant 16 : index
    %c0_18 = arith.constant 0 : index
    %28 = vector.load %arg4[%c16_17, %c0_18] : memref<128x256xf32, #tpu.memory_space<vmem>>, vector<16x256xf32>
    tpu.vector_store %arg4[%c16_17, %c0_18], %27 {strides = array<i32>} : memref<128x256xf32, #tpu.memory_space<vmem>>, vector<16x256xf32>,
    %29 = vector.extract_strided_slice %12 {offsets = [32, 0], sizes = [16, 256], strides = [1, 1]} : vector<128x256xf32> to vector<16x256xf32>
    %cst_19 = arith.constant dense<0.000000e+00> : vector<16x256xf32>
    %30 = tpu.matmul %3, %29, %cst_19 {dimension_numbers = #tpu.dot_dimension_numbers<[1], [0], [0], [1], [0, 0, 1, 1], [], []>} : vector<16x16xf32>, vector<16x256xf32>, vector<16x256xf32> -> vector<16x256xf32>
    %31 = vector.broadcast %4 : vector<16x1xf32> to vector<16x256xf32>
    %32 = arith.addf %30, %31 : vector<16x256xf32>
    %cst_20 = arith.constant 0.00999999977 : f32
    %33 = vector.broadcast %cst_20 : f32 to vector<16x256xf32>
    %34 = arith.mulf %33, %32 : vector<16x256xf32>
    %35 = arith.maximumf %32, %34 : vector<16x256xf32>
    %c32 = arith.constant 32 : index
    %c0_21 = arith.constant 0 : index
    %36 = vector.load %arg4[%c32, %c0_21] : memref<128x256xf32, #tpu.memory_space<vmem>>, vector<16x256xf32>
    tpu.vector_store %arg4[%c32, %c0_21], %35 {strides = array<i32>} : memref<128x256xf32, #tpu.memory_space<vmem>>, vector<16x256xf32>,
    %37 = vector.extract_strided_slice %12 {offsets = [48, 0], sizes = [16, 256], strides = [1, 1]} : vector<128x256xf32> to vector<16x256xf32>
    %cst_22 = arith.constant dense<0.000000e+00> : vector<16x256xf32>
    %38 = tpu.matmul %3, %37, %cst_22 {dimension_numbers = #tpu.dot_dimension_numbers<[1], [0], [0], [1], [0, 0, 1, 1], [], []>} : vector<16x16xf32>, vector<16x256xf32>, vector<16x256xf32> -> vector<16x256xf32>
    %39 = vector.broadcast %4 : vector<16x1xf32> to vector<16x256xf32>
    %40 = arith.addf %38, %39 : vector<16x256xf32>
    %cst_23 = arith.constant 0.00999999977 : f32
    %41 = vector.broadcast %cst_23 : f32 to vector<16x256xf32>
    %42 = arith.mulf %41, %40 : vector<16x256xf32>
    %43 = arith.maximumf %40, %42 : vector<16x256xf32>
    %c48 = arith.constant 48 : index
    %c0_24 = arith.constant 0 : index
    %44 = vector.load %arg4[%c48, %c0_24] : memref<128x256xf32, #tpu.memory_space<vmem>>, vector<16x256xf32>
    tpu.vector_store %arg4[%c48, %c0_24], %43 {strides = array<i32>} : memref<128x256xf32, #tpu.memory_space<vmem>>, vector<16x256xf32>,
    %45 = vector.extract_strided_slice %12 {offsets = [64, 0], sizes = [16, 256], strides = [1, 1]} : vector<128x256xf32> to vector<16x256xf32>
    %cst_25 = arith.constant dense<0.000000e+00> : vector<16x256xf32>
    %46 = tpu.matmul %3, %45, %cst_25 {dimension_numbers = #tpu.dot_dimension_numbers<[1], [0], [0], [1], [0, 0, 1, 1], [], []>} : vector<16x16xf32>, vector<16x256xf32>, vector<16x256xf32> -> vector<16x256xf32>
    %47 = vector.broadcast %4 : vector<16x1xf32> to vector<16x256xf32>
    %48 = arith.addf %46, %47 : vector<16x256xf32>
    %cst_26 = arith.constant 0.00999999977 : f32
    %49 = vector.broadcast %cst_26 : f32 to vector<16x256xf32>
    %50 = arith.mulf %49, %48 : vector<16x256xf32>
    %51 = arith.maximumf %48, %50 : vector<16x256xf32>
    %c64 = arith.constant 64 : index
    %c0_27 = arith.constant 0 : index
    %52 = vector.load %arg4[%c64, %c0_27] : memref<128x256xf32, #tpu.memory_space<vmem>>, vector<16x256xf32>
    tpu.vector_store %arg4[%c64, %c0_27], %51 {strides = array<i32>} : memref<128x256xf32, #tpu.memory_space<vmem>>, vector<16x256xf32>,
    %53 = vector.extract_strided_slice %12 {offsets = [80, 0], sizes = [16, 256], strides = [1, 1]} : vector<128x256xf32> to vector<16x256xf32>
    %cst_28 = arith.constant dense<0.000000e+00> : vector<16x256xf32>
    %54 = tpu.matmul %3, %53, %cst_28 {dimension_numbers = #tpu.dot_dimension_numbers<[1], [0], [0], [1], [0, 0, 1, 1], [], []>} : vector<16x16xf32>, vector<16x256xf32>, vector<16x256xf32> -> vector<16x256xf32>
    %55 = vector.broadcast %4 : vector<16x1xf32> to vector<16x256xf32>
    %56 = arith.addf %54, %55 : vector<16x256xf32>
    %cst_29 = arith.constant 0.00999999977 : f32
    %57 = vector.broadcast %cst_29 : f32 to vector<16x256xf32>
    %58 = arith.mulf %57, %56 : vector<16x256xf32>
    %59 = arith.maximumf %56, %58 : vector<16x256xf32>
    %c80 = arith.constant 80 : index
    %c0_30 = arith.constant 0 : index
    %60 = vector.load %arg4[%c80, %c0_30] : memref<128x256xf32, #tpu.memory_space<vmem>>, vector<16x256xf32>
    tpu.vector_store %arg4[%c80, %c0_30], %59 {strides = array<i32>} : memref<128x256xf32, #tpu.memory_space<vmem>>, vector<16x256xf32>,
    %61 = vector.extract_strided_slice %12 {offsets = [96, 0], sizes = [16, 256], strides = [1, 1]} : vector<128x256xf32> to vector<16x256xf32>
    %cst_31 = arith.constant dense<0.000000e+00> : vector<16x256xf32>
    %62 = tpu.matmul %3, %61, %cst_31 {dimension_numbers = #tpu.dot_dimension_numbers<[1], [0], [0], [1], [0, 0, 1, 1], [], []>} : vector<16x16xf32>, vector<16x256xf32>, vector<16x256xf32> -> vector<16x256xf32>
    %63 = vector.broadcast %4 : vector<16x1xf32> to vector<16x256xf32>
    %64 = arith.addf %62, %63 : vector<16x256xf32>
    %cst_32 = arith.constant 0.00999999977 : f32
    %65 = vector.broadcast %cst_32 : f32 to vector<16x256xf32>
    %66 = arith.mulf %65, %64 : vector<16x256xf32>
    %67 = arith.maximumf %64, %66 : vector<16x256xf32>
    %c96 = arith.constant 96 : index
    %c0_33 = arith.constant 0 : index
    %68 = vector.load %arg4[%c96, %c0_33] : memref<128x256xf32, #tpu.memory_space<vmem>>, vector<16x256xf32>
    tpu.vector_store %arg4[%c96, %c0_33], %67 {strides = array<i32>} : memref<128x256xf32, #tpu.memory_space<vmem>>, vector<16x256xf32>,
    %69 = vector.extract_strided_slice %12 {offsets = [112, 0], sizes = [16, 256], strides = [1, 1]} : vector<128x256xf32> to vector<16x256xf32>
    %cst_34 = arith.constant dense<0.000000e+00> : vector<16x256xf32>
    %70 = tpu.matmul %3, %69, %cst_34 {dimension_numbers = #tpu.dot_dimension_numbers<[1], [0], [0], [1], [0, 0, 1, 1], [], []>} : vector<16x16xf32>, vector<16x256xf32>, vector<16x256xf32> -> vector<16x256xf32>
    %71 = vector.broadcast %4 : vector<16x1xf32> to vector<16x256xf32>
    %72 = arith.addf %70, %71 : vector<16x256xf32>
    %cst_35 = arith.constant 0.00999999977 : f32
    %73 = vector.broadcast %cst_35 : f32 to vector<16x256xf32>
    %74 = arith.mulf %73, %72 : vector<16x256xf32>
    %75 = arith.maximumf %72, %74 : vector<16x256xf32>
    %c112 = arith.constant 112 : index
    %c0_36 = arith.constant 0 : index
    %76 = vector.load %arg4[%c112, %c0_36] : memref<128x256xf32, #tpu.memory_space<vmem>>, vector<16x256xf32>
    tpu.vector_store %arg4[%c112, %c0_36], %75 {strides = array<i32>} : memref<128x256xf32, #tpu.memory_space<vmem>>, vector<16x256xf32>,
    %c0_37 = arith.constant 0 : index
    %c0_38 = arith.constant 0 : index
    %77 = vector.load %arg4[%c0_37, %c0_38] : memref<128x256xf32, #tpu.memory_space<vmem>>, vector<128x256xf32>
    %cst_39 = arith.constant dense<0.000000e+00> : vector<8x256xf32>
    %78 = tpu.matmul %5, %77, %cst_39 {dimension_numbers = #tpu.dot_dimension_numbers<[1], [0], [0], [1], [0, 0, 1, 1], [], []>} : vector<8x128xf32>, vector<128x256xf32>, vector<8x256xf32> -> vector<8x256xf32>
    %79 = vector.broadcast %6 : vector<8x1xf32> to vector<8x256xf32>
    %80 = arith.addf %78, %79 : vector<8x256xf32>
    %c0_40 = arith.constant 0 : index
    %c0_41 = arith.constant 0 : index
    %81 = vector.load %arg3[%c0_40, %c0_41] : memref<8x256xf32, #tpu.memory_space<vmem>>, vector<8x256xf32>
    tpu.vector_store %arg3[%c0_40, %c0_41], %80 {strides = array<i32>} : memref<8x256xf32, #tpu.memory_space<vmem>>, vector<8x256xf32>,
    return
  }
  func.func @transform_0(%arg0: i32) -> (i32, i32) {
    %c0_i32 = arith.constant 0 : i32
    %c0_i32_0 = arith.constant 0 : i32
    return %arg0, %c0_i32 : i32, i32
  }
  func.func @transform_1(%arg0: i32) -> (i32, i32) {
    %c0_i32 = arith.constant 0 : i32
    %c0_i32_0 = arith.constant 0 : i32
    %c0_i32_1 = arith.constant 0 : i32
    return %c0_i32, %c0_i32_0 : i32, i32
  }
  func.func @transform_2(%arg0: i32) -> (i32, i32) {
    %c0_i32 = arith.constant 0 : i32
    %c0_i32_0 = arith.constant 0 : i32
    return %arg0, %c0_i32 : i32, i32
  }
}

</mosaic_0001>

<bundles_post_ra>
// kernel: simplenet_forward.1
= control target key start
LH: loop header
LB: loop body
LE: loop exit
PB: predicated region body
PF: predicated region fallthrough
CT: control target
= control target key end

     0   :  { %s1556_s9 = smov 0   ;;  %s1761_s0 = inlined_call_operand.vmem [shape: f32[32,256], index: 0, kind: input, shape index: {}]   ;;  %s1762_s1 = inlined_call_operand.vmem [shape: f32[152,129], index: 1, kind: input, shape index: {}]   ;;  %s1763_s2 = inlined_call_operand.vmem [shape: f32[16,256], index: 2, kind: output, shape index: {}]  }
   0x1 LB: > { %s1562_s10 = sadd.s32 4294967295, %s1536_s9   ;;  %p1406_p0 = scmp.ge.s32.totalorder %s1536_s9, 1  ;;  %s1536_s9 = sphi %s1556_s9, %s12_s9  }
   0x2   : > { %p114_p1 = scmp.lt.s32.totalorder %s1536_s9, 3 }
   0x4   : > { %p115_p2 = pnand %p1406_p0, %p114_p1 }
   0x5   : > { %s1407_s11 = sshll.u32 (!%p115_p2), %s1562_s10, 1  ;;  %v1538_v0 = vmov (!%p115_p2), 0.0   ;;  %v153_v1 = vld [vmem:[%s1762_s1] sm:$0xff] (!%p115_p2)  ;;  %v1539_v3 = vmov (!%p115_p2), 16   ;;  %v154_v4 = vld [vmem:[%s1762_s1 + $0x10] sm:$0xff] (!%p115_p2)  ;;  %vm253_vm0 = vcmask (!%p115_p2), 130048  }
   0x6   : > { %118 = sbr.rel (%p115_p2) target bundleno = 753 (0x2f1), region = 28  ;;  %p138_p3 = scmp.lt.s32.totalorder (!%p115_p2), %s1407_s11, 3  ;;  %350 = vmatprep.mubr.f32.mxu0 (!%p115_p2), %v1538_v0  ;;  %589 = vmatprep.mubr.f32.mxu1 (!%p115_p2), %v1538_v0  ;;  %v155_v2 = vld [vmem:[%s1762_s1 + $0x20] sm:$0xff] (!%p115_p2)  ;;  %v156_v5 = vld [vmem:[%s1762_s1 + $0x30] sm:$0xff] (!%p115_p2) }
   0x7   : > { %1527 = vset.pattern.permute.xlu0 (!%p115_p2), %v1539_v3  ;;  %1528 = vset.pattern.permute.xlu1 (!%p115_p2), %v1539_v3  ;;  %v157_v12 = vld [vmem:[%s1762_s1 + $0x40] sm:$0xff] (!%p115_p2)  ;;  %v158_v13 = vld [vmem:[%s1762_s1 + $0x50] sm:$0xff] (!%p115_p2)  ;;  %p144_p4 = scmp.lt.s32.totalorder (!%p115_p2), %s1562_s10, 1 }
   0x8   : > { %175 = vperm.xlu0 (!%p115_p2), %1527, %v153_v1   ;;  %185 = vperm.xlu1 (!%p115_p2), %1528, %v155_v2   ;;  %v159_v14 = vld [vmem:[%s1762_s1 + $0x60] sm:$0xff] (!%p115_p2)  ;;  %v160_v15 = vld [vmem:[%s1762_s1 + $0x70] sm:$0xff] (!%p115_p2) }
   0x9   : > { %v161_v16 = vld [vmem:[%s1762_s1 + $0x80] sm:$0xff] (!%p115_p2)  ;;  %v162_v17 = vld [vmem:[%s1762_s1 + $0x90] sm:$0xff] (!%p115_p2) }
   0xa   : > { %v163_v18 = vld [vmem:[%s1762_s1 + $0xa0] sm:$0xff] (!%p115_p2)  ;;  %v164_v19 = vld [vmem:[%s1762_s1 + $0xb0] sm:$0xff] (!%p115_p2) }
   0xb   : > { %v165_v20 = vld [vmem:[%s1762_s1 + $0xc0] sm:$0xff] (!%p115_p2)  ;;  %v166_v21 = vld [vmem:[%s1762_s1 + $0xd0] sm:$0xff] (!%p115_p2) }
   0xc   : > { %180 = vperm.xlu0 (!%p115_p2), %1527, %v154_v4   ;;  %190 = vperm.xlu1 (!%p115_p2), %1528, %v156_v5   ;;  %v167_v22 = vld [vmem:[%s1762_s1 + $0xe0] sm:$0xff] (!%p115_p2)  ;;  %v168_v23 = vld [vmem:[%s1762_s1 + $0xf0] sm:$0xff] (!%p115_p2) }
   0xd   : > { %s1765_s11 = smov (!%p138_p3, %s1407_s11), 3  ;;  %v1633_v24 = vld [vmem:[%s1762_s1 + $0x100] sm:$0xff]  ;;  %v1638_v25 = vld [vmem:[%s1762_s1 + $0x110] sm:$0xff]  ;;  %s1767_s10 = smov (!%p144_p4, %s1562_s10), 1 }
   0xe   : > { %s1446_s16 = sshll.u32 %s1765_s11, 4  ;;  %s1447_s30 = sshll.u32 %s1767_s10, 4 }
   0xf   : > { %s142_s19 = scalar_lea.vmem %s1761_s0, %s1446_s16  ;;  %s148_s5 = scalar_lea.vmem %s1763_s2, %s1447_s30 }
  0x10   : > { %v150_v6 = vld [vmem:[%s142_s19 + $0x8] sm:$0xff]  ;;  %v152_v7 = vld [vmem:[%s142_s19 + $0x18] sm:$0xff]  ;;  %v149_v8 = vld [vmem:[%s142_s19] sm:$0xff]  ;;  %195 = vperm.xlu0 %1527, %v157_v12   ;;  %200 = vperm.xlu1 %1528, %v158_v13  }
  0x11   : > { %v1448_v9 = vpack.c.bf16 %v152_v7, %v150_v6  ;;  %v151_v10 = vld [vmem:[%s142_s19 + $0x10] sm:$0xff] }
  0x12   : > { %v1450_v11 = vpack.c.bf16 %v151_v10, %v149_v8 }
  0x13   : > { %1449 = vmatprep.subr.bf16.mxu0 %v1448_v9 }
  0x14   : > { %1451 = vmatpush1.bf16.msra.mxu0 %v1450_v11  ;;  %205 = vperm.xlu0 %1527, %v159_v14  }
  0x15   : > { %210 = vperm.xlu1 %1528, %v160_v15  }
  0x17   : > { %1412 = vmatmul.mubr.msk.f32.vlgmr.msra.gmra.mrb[0].mxu0 %vm253_vm0, %v153_v1 }
  0x18   : > { %356 = vmatprep.mubr.f32.mxu0 %v1538_v0  ;;  %215 = vperm.xlu0 %1527, %v161_v16  }
  0x19   : > { %220 = vperm.xlu1 %1528, %v162_v17  }
  0x1b   : > { %1413 = vmatmul.mubr.msk.f32.gmra.mrb[2].mxu0 %vm253_vm0, %v154_v4 }
  0x1c   : > { %362 = vmatprep.mubr.f32.mxu0 %v1538_v0  ;;  %225 = vperm.xlu0 %1527, %v163_v18  }
  0x1d   : > { %230 = vperm.xlu1 %1528, %v164_v19  }
  0x1f   : > { %1414 = vmatmul.mubr.msk.f32.gmra.mrb[4].mxu0 %vm253_vm0, %v155_v2 }
  0x20   : > { %368 = vmatprep.mubr.f32.mxu0 %v1538_v0  ;;  %235 = vperm.xlu0 %1527, %v165_v20  }
  0x21   : > { %240 = vperm.xlu1 %1528, %v166_v21  }
  0x23   : > { %1415 = vmatmul.mubr.msk.f32.gmra.mrb[6].mxu0 %vm253_vm0, %v156_v5 }
  0x24   : > { %374 = vmatprep.mubr.f32.mxu0 %v1538_v0  ;;  %245 = vperm.xlu0 %1527, %v167_v22  }
  0x25   : > { %250 = vperm.xlu1 %1528, %v168_v23  }
  0x27   : > { %1416 = vmatmul.mubr.msk.f32.gmra.mrb[8].mxu0 %vm253_vm0, %v157_v12 }
  0x28   : > { %380 = vmatprep.mubr.f32.mxu0 %v1538_v0  ;;  %513 = vperm.xlu0 %1527, %v1633_v24  }
  0x29   : > { %518 = vperm.xlu1 %1528, %v1638_v25  }
  0x2b   : > { %1417 = vmatmul.mubr.msk.f32.gmra.mrb[10].mxu0 %vm253_vm0, %v158_v13 }
  0x2c   : > { %386 = vmatprep.mubr.f32.mxu0 %v1538_v0 }
  0x2f   : > { %1418 = vmatmul.mubr.msk.f32.gmra.mrb[12].mxu0 %vm253_vm0, %v159_v14 }
  0x30   : > { %392 = vmatprep.mubr.f32.mxu0 %v1538_v0 }
  0x33   : > { %1419 = vmatmul.mubr.msk.f32.gmra.mrb[14].mxu0 %vm253_vm0, %v160_v15 }
  0x34   : > { %398 = vmatprep.mubr.f32.mxu0 %v1538_v0 }
  0x37   : > { %1420 = vmatmul.mubr.msk.f32.gmra.mrb[16].mxu0 %vm253_vm0, %v161_v16 }
  0x38   : > { %404 = vmatprep.mubr.f32.mxu0 %v1538_v0 }
  0x3b   : > { %1421 = vmatmul.mubr.msk.f32.gmra.mrb[18].mxu0 %vm253_vm0, %v162_v17 }
  0x3c   : > { %410 = vmatprep.mubr.f32.mxu0 %v1538_v0 }
  0x3f   : > { %1422 = vmatmul.mubr.msk.f32.gmra.mrb[20].mxu0 %vm253_vm0, %v163_v18 }
  0x40   : > { %416 = vmatprep.mubr.f32.mxu0 %v1538_v0 }
  0x43   : > { %1423 = vmatmul.mubr.msk.f32.gmra.mrb[22].mxu0 %vm253_vm0, %v164_v19 }
  0x44   : > { %422 = vmatprep.mubr.f32.mxu0 %v1538_v0 }
  0x47   : > { %1424 = vmatmul.mubr.msk.f32.gmra.mrb[24].mxu0 %vm253_vm0, %v165_v20 }
  0x48   : > { %428 = vmatprep.mubr.f32.mxu0 %v1538_v0 }
  0x4b   : > { %1425 = vmatmul.mubr.msk.f32.gmra.mrb[26].mxu0 %vm253_vm0, %v166_v21 }
  0x4c   : > { %434 = vmatprep.mubr.f32.mxu0 %v1538_v0 }
  0x4f   : > { %1426 = vmatmul.mubr.msk.f32.gmra.mrb[28].mxu0 %vm253_vm0, %v167_v22 }
  0x50   : > { %440 = vmatprep.mubr.f32.mxu0 %v1538_v0 }
  0x53   : > { %1427 = vmatmul.mubr.msk.f32.gmra.mrb[30].mxu0 %vm253_vm0, %v168_v23 }
  0x54   : > { %1338 = vmatprep.mubr.f32.mxu0 %v1538_v0 }
  0x87   : > { %v176_v26 = vpop.permute.xlu0 %175  ;;  %v186_v36 = vpop.permute.xlu1 %185 }
  0x8b   : > { %v181_v31 = vpop.permute.xlu0 %180  ;;  %v191_v50 = vpop.permute.xlu1 %190 }
  0x8f   : > { %v196_v59 = vpop.permute.xlu0 %195  ;;  %v201_v7 = vpop.permute.xlu1 %200 }
  0x93   : > { %v206_v16 = vpop.permute.xlu0 %205 }
  0xea   : > { %v352_v27 = vpop.f32.mrb[0].mxu0 }
  0xeb   : > { %v353_v28 = vadd.f32 %v352_v27, %v176_v26  ;;  %v354_v29 = vpop.f32.mrb[1].mxu0 }
  0xec   : > { %v355_v30 = vadd.f32 %v354_v29, %v176_v26  ;;  %v211_v29 = vpop.permute.xlu1 %210 }
  0xed   : > { %v447_v33 = vmul.f32 0.01, %v353_v28 }
  0xee   : > { %v358_v32 = vpop.f32.mrb[2].mxu0  ;;  %v448_v37 = vmul.f32 0.01, %v355_v30 }
  0xef   : > { %v359_v34 = vadd.f32 %v358_v32, %v181_v31  ;;  %v360_v35 = vpop.f32.mrb[3].mxu0  ;;  %v479_v42 = vmax.f32 %v353_v28, %v447_v33 }
  0xf0   : > { %v361_v38 = vadd.f32 %v360_v35, %v181_v31  ;;  %v480_v47 = vmax.f32 %v355_v30, %v448_v37 }
  0xf1   : > { %v449_v39 = vmul.f32 0.01, %v359_v34 }
  0xf2   : > { %v450_v40 = vmul.f32 0.01, %v361_v38  ;;  %v364_v41 = vpop.f32.mrb[4].mxu0 }
  0xf3   : > { %v481_v43 = vmax.f32 %v359_v34, %v449_v39  ;;  %v365_v44 = vadd.f32 %v364_v41, %v186_v36  ;;  %v366_v45 = vpop.f32.mrb[5].mxu0 }
  0xf4   : > { %v367_v46 = vadd.f32 %v366_v45, %v186_v36  ;;  %v482_v48 = vmax.f32 %v361_v38, %v450_v40  ;;  %v216_v38 = vpop.permute.xlu0 %215 }
  0xf5   : > { %v1454_v49 = vpack.c.bf16 %v481_v43, %v479_v42  ;;  %v451_v53 = vmul.f32 0.01, %v365_v44 }
  0xf6   : > { %v370_v51 = vpop.f32.mrb[6].mxu0  ;;  %v1452_v52 = vpack.c.bf16 %v482_v48, %v480_v47  ;;  %v452_v56 = vmul.f32 0.01, %v367_v46 }
  0xf7   : > { %v371_v54 = vadd.f32 %v370_v51, %v191_v50  ;;  %v372_v55 = vpop.f32.mrb[7].mxu0  ;;  %v483_v62 = vmax.f32 %v365_v44, %v451_v53 }
  0xf8   : > { %v373_v57 = vadd.f32 %v372_v55, %v191_v50  ;;  %1453 = vmatprep.subr.bf16.mxu1 %v1452_v52  ;;  %v484_v3 = vmax.f32 %v367_v46, %v452_v56 }
  0xf9   : > { %v453_v58 = vmul.f32 0.01, %v371_v54  ;;  %1455 = vmatpush1.bf16.msra.mxu1 %v1454_v49  ;;  %v221_v49 = vpop.permute.xlu1 %220 }
  0xfa   : > { %v454_v60 = vmul.f32 0.01, %v373_v57  ;;  %v376_v61 = vpop.f32.mrb[8].mxu0 }
  0xfb   : > { %v485_v63 = vmax.f32 %v371_v54, %v453_v58  ;;  %v377_v1 = vadd.f32 %v376_v61, %v196_v59  ;;  %v378_v2 = vpop.f32.mrb[9].mxu0  ;;  %v226_v58 = vpop.permute.xlu0 %225 }
  0xfc   : > { %v486_v4 = vmax.f32 %v373_v57, %v454_v60  ;;  %v379_v5 = vadd.f32 %v378_v2, %v196_v59  ;;  %1428 = vmatmul.mubr.msk.f32.vlgmr.msra.gmra.mrb[0].mxu1 %vm253_vm0, %v1633_v24 }
  0xfd   : > { %v1458_v6 = vpack.c.bf16 %v485_v63, %v483_v62  ;;  %595 = vmatprep.mubr.f32.mxu1 %v1538_v0  ;;  %v455_v10 = vmul.f32 0.01, %v377_v1 }
  0xfe   : > { %v382_v8 = vpop.f32.mrb[10].mxu0  ;;  %v1456_v9 = vpack.c.bf16 %v486_v4, %v484_v3  ;;  %v456_v13 = vmul.f32 0.01, %v379_v5 }
  0xff   : > { %v383_v11 = vadd.f32 %v382_v8, %v201_v7  ;;  %v384_v12 = vpop.f32.mrb[11].mxu0  ;;  %v487_v19 = vmax.f32 %v377_v1, %v455_v10 }
 0x100   : > { %v385_v14 = vadd.f32 %v384_v12, %v201_v7  ;;  %1429 = vmatmul.mubr.msk.f32.gmra.mrb[2].mxu1 %vm253_vm0, %v1638_v25  ;;  %1457 = vmatprep.subr.bf16.mxu1 %v1456_v9  ;;  %v488_v23 = vmax.f32 %v379_v5, %v456_v13 }
 0x101   : > { %v457_v15 = vmul.f32 0.01, %v383_v11  ;;  %1459 = vmatpush1.bf16.msra.mxu1 %v1458_v6  ;;  %678 = vmatprep.mubr.f32.mxu1 %v1538_v0  ;;  %v231_v6 = vpop.permute.xlu1 %230 }
 0x102   : > { %v458_v17 = vmul.f32 0.01, %v385_v14  ;;  %v388_v18 = vpop.f32.mrb[12].mxu0 }
 0x103   : > { %v489_v20 = vmax.f32 %v383_v11, %v457_v15  ;;  %v389_v21 = vadd.f32 %v388_v18, %v206_v16  ;;  %v390_v22 = vpop.f32.mrb[13].mxu0  ;;  %v236_v15 = vpop.permute.xlu0 %235 }
 0x104   : > { %v490_v26 = vmax.f32 %v385_v14, %v458_v17  ;;  %v391_v27 = vadd.f32 %v390_v22, %v206_v16  ;;  %1430 = vmatmul.mubr.msk.f32.vlgmr.msra.gmra.mrb[4].mxu1 %vm253_vm0, %v1633_v24 }
 0x105   : > { %v1462_v28 = vpack.c.bf16 %v489_v20, %v487_v19  ;;  %684 = vmatprep.mubr.f32.mxu1 %v1538_v0  ;;  %v459_v32 = vmul.f32 0.01, %v389_v21 }
 0x106   : > { %v394_v30 = vpop.f32.mrb[14].mxu0  ;;  %v1460_v31 = vpack.c.bf16 %v490_v26, %v488_v23  ;;  %v460_v35 = vmul.f32 0.01, %v391_v27 }
 0x107   : > { %v395_v33 = vadd.f32 %v394_v30, %v211_v29  ;;  %v396_v34 = vpop.f32.mrb[15].mxu0  ;;  %v491_v41 = vmax.f32 %v389_v21, %v459_v32 }
 0x108   : > { %v397_v36 = vadd.f32 %v396_v34, %v211_v29  ;;  %1431 = vmatmul.mubr.msk.f32.gmra.mrb[6].mxu1 %vm253_vm0, %v1638_v25  ;;  %1461 = vmatprep.subr.bf16.mxu1 %v1460_v31  ;;  %v492_v45 = vmax.f32 %v391_v27, %v460_v35 }
 0x109   : > { %v461_v37 = vmul.f32 0.01, %v395_v33  ;;  %1463 = vmatpush1.bf16.msra.mxu1 %v1462_v28  ;;  %767 = vmatprep.mubr.f32.mxu1 %v1538_v0  ;;  %v241_v28 = vpop.permute.xlu1 %240 }
 0x10a   : > { %v462_v39 = vmul.f32 0.01, %v397_v36  ;;  %v400_v40 = vpop.f32.mrb[16].mxu0 }
 0x10b   : > { %v493_v42 = vmax.f32 %v395_v33, %v461_v37  ;;  %v401_v43 = vadd.f32 %v400_v40, %v216_v38  ;;  %v402_v44 = vpop.f32.mrb[17].mxu0  ;;  %v246_v37 = vpop.permute.xlu0 %245 }
 0x10c   : > { %v494_v46 = vmax.f32 %v397_v36, %v462_v39  ;;  %v403_v47 = vadd.f32 %v402_v44, %v216_v38  ;;  %1432 = vmatmul.mubr.msk.f32.vlgmr.msra.gmra.mrb[8].mxu1 %vm253_vm0, %v1633_v24 }
 0x10d   : > { %v1466_v48 = vpack.c.bf16 %v493_v42, %v491_v41  ;;  %773 = vmatprep.mubr.f32.mxu1 %v1538_v0  ;;  %v463_v52 = vmul.f32 0.01, %v401_v43 }
 0x10e   : > { %v406_v50 = vpop.f32.mrb[18].mxu0  ;;  %v1464_v51 = vpack.c.bf16 %v494_v46, %v492_v45  ;;  %v464_v55 = vmul.f32 0.01, %v403_v47 }
 0x10f   : > { %v407_v53 = vadd.f32 %v406_v50, %v221_v49  ;;  %v408_v54 = vpop.f32.mrb[19].mxu0  ;;  %v495_v61 = vmax.f32 %v401_v43, %v463_v52 }
 0x110   : > { %v409_v56 = vadd.f32 %v408_v54, %v221_v49  ;;  %1433 = vmatmul.mubr.msk.f32.gmra.mrb[10].mxu1 %vm253_vm0, %v1638_v25  ;;  %1465 = vmatprep.subr.bf16.mxu1 %v1464_v51  ;;  %v496_v2 = vmax.f32 %v403_v47, %v464_v55 }
 0x111   : > { %v465_v57 = vmul.f32 0.01, %v407_v53  ;;  %1467 = vmatpush1.bf16.msra.mxu1 %v1466_v48  ;;  %856 = vmatprep.mubr.f32.mxu1 %v1538_v0  ;;  %v251_v48 = vpop.permute.xlu1 %250 }
 0x112   : > { %v466_v59 = vmul.f32 0.01, %v409_v56  ;;  %v412_v60 = vpop.f32.mrb[20].mxu0 }
 0x113   : > { %v497_v62 = vmax.f32 %v407_v53, %v465_v57  ;;  %v413_v63 = vadd.f32 %v412_v60, %v226_v58  ;;  %v414_v1 = vpop.f32.mrb[21].mxu0 }
 0x114   : > { %v498_v3 = vmax.f32 %v409_v56, %v466_v59  ;;  %v415_v4 = vadd.f32 %v414_v1, %v226_v58  ;;  %1434 = vmatmul.mubr.msk.f32.vlgmr.msra.gmra.mrb[12].mxu1 %vm253_vm0, %v1633_v24  ;;  %v172_v1 = vld [vmem:[%s1762_s1 + $0x128] sm:$0xff] }
 0x115   : > { %v1470_v5 = vpack.c.bf16 %v497_v62, %v495_v61  ;;  %862 = vmatprep.mubr.f32.mxu1 %v1538_v0  ;;  %v467_v9 = vmul.f32 0.01, %v413_v63 }
 0x116   : > { %v418_v7 = vpop.f32.mrb[22].mxu0  ;;  %v1468_v8 = vpack.c.bf16 %v498_v3, %v496_v2  ;;  %v468_v12 = vmul.f32 0.01, %v415_v4  ;;  %v1540_v2 = vmov 0   ;;  %v1714_v3 = vpop.permute.xlu0 %513 }
 0x117   : > { %v419_v10 = vadd.f32 %v418_v7, %v231_v6  ;;  %v420_v11 = vpop.f32.mrb[23].mxu0  ;;  %v499_v18 = vmax.f32 %v413_v63, %v467_v9  ;;  %1529 = vset.pattern.permute.xlu0 %v1540_v2  ;;  %v1718_v7 = vpop.permute.xlu1 %518 }
 0x118   : > { %v421_v13 = vadd.f32 %v420_v11, %v231_v6  ;;  %1435 = vmatmul.mubr.msk.f32.gmra.mrb[14].mxu1 %vm253_vm0, %v1638_v25  ;;  %1469 = vmatprep.subr.bf16.mxu1 %v1468_v8  ;;  %v500_v22 = vmax.f32 %v415_v4, %v468_v12 }
 0x119   : > { %v469_v14 = vmul.f32 0.01, %v419_v10  ;;  %1471 = vmatpush1.bf16.msra.mxu1 %v1470_v5  ;;  %945 = vmatprep.mubr.f32.mxu1 %v1538_v0 }
 0x11a   : > { %v470_v16 = vmul.f32 0.01, %v421_v13  ;;  %v424_v17 = vpop.f32.mrb[24].mxu0  ;;  %1271 = vperm.xlu0 %1529, %v172_v1  }
 0x11b   : > { %v501_v19 = vmax.f32 %v419_v10, %v469_v14  ;;  %v425_v20 = vadd.f32 %v424_v17, %v236_v15  ;;  %v426_v21 = vpop.f32.mrb[25].mxu0 }
 0x11c   : > { %v502_v23 = vmax.f32 %v421_v13, %v470_v16  ;;  %v427_v26 = vadd.f32 %v426_v21, %v236_v15  ;;  %1436 = vmatmul.mubr.msk.f32.vlgmr.msra.gmra.mrb[16].mxu1 %vm253_vm0, %v1633_v24 }
 0x11d   : > { %v1474_v27 = vpack.c.bf16 %v501_v19, %v499_v18  ;;  %951 = vmatprep.mubr.f32.mxu1 %v1538_v0  ;;  %v471_v31 = vmul.f32 0.01, %v425_v20 }
 0x11e   : > { %v430_v29 = vpop.f32.mrb[26].mxu0  ;;  %v1472_v30 = vpack.c.bf16 %v502_v23, %v500_v22  ;;  %v472_v34 = vmul.f32 0.01, %v427_v26 }
 0x11f   : > { %v431_v32 = vadd.f32 %v430_v29, %v241_v28  ;;  %v432_v33 = vpop.f32.mrb[27].mxu0  ;;  %v503_v40 = vmax.f32 %v425_v20, %v471_v31 }
 0x120   : > { %v433_v35 = vadd.f32 %v432_v33, %v241_v28  ;;  %1437 = vmatmul.mubr.msk.f32.gmra.mrb[18].mxu1 %vm253_vm0, %v1638_v25  ;;  %1473 = vmatprep.subr.bf16.mxu1 %v1472_v30  ;;  %v504_v44 = vmax.f32 %v427_v26, %v472_v34 }
 0x121   : > { %v473_v36 = vmul.f32 0.01, %v431_v32  ;;  %1475 = vmatpush1.bf16.msra.mxu1 %v1474_v27  ;;  %1034 = vmatprep.mubr.f32.mxu1 %v1538_v0 }
 0x122   : > { %v474_v38 = vmul.f32 0.01, %v433_v35  ;;  %v436_v39 = vpop.f32.mrb[28].mxu0 }
 0x123   : > { %v505_v41 = vmax.f32 %v431_v32, %v473_v36  ;;  %v437_v42 = vadd.f32 %v436_v39, %v246_v37  ;;  %v438_v43 = vpop.f32.mrb[29].mxu0 }
 0x124   : > { %v506_v45 = vmax.f32 %v433_v35, %v474_v38  ;;  %v439_v46 = vadd.f32 %v438_v43, %v246_v37  ;;  %1438 = vmatmul.mubr.msk.f32.vlgmr.msra.gmra.mrb[20].mxu1 %vm253_vm0, %v1633_v24 }
 0x125   : > { %v1478_v47 = vpack.c.bf16 %v505_v41, %v503_v40  ;;  %1040 = vmatprep.mubr.f32.mxu1 %v1538_v0  ;;  %v475_v51 = vmul.f32 0.01, %v437_v42 }
 0x126   : > { %v442_v49 = vpop.f32.mrb[30].mxu0  ;;  %v1476_v50 = vpack.c.bf16 %v506_v45, %v504_v44  ;;  %v476_v54 = vmul.f32 0.01, %v439_v46 }
 0x127   : > { %v443_v52 = vadd.f32 %v442_v49, %v251_v48  ;;  %v444_v53 = vpop.f32.mrb[31].mxu0  ;;  %v507_v58 = vmax.f32 %v437_v42, %v475_v51 }
 0x128   : > { %v445_v55 = vadd.f32 %v444_v53, %v251_v48  ;;  %1439 = vmatmul.mubr.msk.f32.gmra.mrb[22].mxu1 %vm253_vm0, %v1638_v25  ;;  %1477 = vmatprep.subr.bf16.mxu1 %v1476_v50  ;;  %v508_v60 = vmax.f32 %v439_v46, %v476_v54 }
 0x129   : > { %v477_v56 = vmul.f32 0.01, %v443_v52  ;;  %1479 = vmatpush1.bf16.msra.mxu1 %v1478_v47  ;;  %1123 = vmatprep.mubr.f32.mxu1 %v1538_v0 }
 0x12a   : > { %v478_v57 = vmul.f32 0.01, %v445_v55 }
 0x12b   : > { %v509_v59 = vmax.f32 %v443_v52, %v477_v56 }
 0x12c   : > { %v510_v61 = vmax.f32 %v445_v55, %v478_v57  ;;  %1440 = vmatmul.mubr.msk.f32.vlgmr.msra.gmra.mrb[24].mxu1 %vm253_vm0, %v1633_v24 }
 0x12d   : > { %v1482_v62 = vpack.c.bf16 %v509_v59, %v507_v58  ;;  %1129 = vmatprep.mubr.f32.mxu1 %v1538_v0 }
 0x12e   : > { %v1480_v63 = vpack.c.bf16 %v510_v61, %v508_v60 }
 0x130   : > { %1441 = vmatmul.mubr.msk.f32.gmra.mrb[26].mxu1 %vm253_vm0, %v1638_v25  ;;  %1481 = vmatprep.subr.bf16.mxu1 %v1480_v63 }
 0x131   : > { %1483 = vmatpush1.bf16.msra.mxu1 %v1482_v62  ;;  %1212 = vmatprep.mubr.f32.mxu1 %v1538_v0 }
 0x134   : > { %1442 = vmatmul.mubr.msk.f32.vlgmr.msra.gmra.mrb[28].mxu1 %vm253_vm0, %v1633_v24 }
 0x135   : > { %1218 = vmatprep.mubr.f32.mxu1 %v1538_v0 }
 0x138   : > { %1443 = vmatmul.mubr.msk.f32.gmra.mrb[30].mxu1 %vm253_vm0, %v1638_v25 }
 0x1cf   : > { %v591_v4 = vpop.f32.mrb[0].mxu1 }
 0x1d0   : > { %v592_v5 = vadd.f32 %v591_v4, %v1714_v3  ;;  %v593_v6 = vpop.f32.mrb[1].mxu1 }
 0x1d1   : > { %v594_v24 = vadd.f32 %v593_v6, %v1714_v3 }
 0x1d2   : > { %v602_v8 = vmul.f32 0.01, %v592_v5 }
 0x1d3   : > { %v597_v0 = vpop.f32.mrb[2].mxu1  ;;  %v603_v10 = vmul.f32 0.01, %v594_v24 }
 0x1d4   : > { %v598_v25 = vadd.f32 %v597_v0, %v1718_v7  ;;  %v599_v9 = vpop.f32.mrb[3].mxu1  ;;  %v606_v15 = vmax.f32 %v592_v5, %v602_v8 }
 0x1d5   : > { %v600_v11 = vadd.f32 %v599_v9, %v1718_v7  ;;  %v607_v19 = vmax.f32 %v594_v24, %v603_v10 }
 0x1d6   : > { %v604_v12 = vmul.f32 0.01, %v598_v25 }
 0x1d7   : > { %v605_v13 = vmul.f32 0.01, %v600_v11  ;;  %v680_v14 = vpop.f32.mrb[4].mxu1 }
 0x1d8   : > { %v608_v16 = vmax.f32 %v598_v25, %v604_v12  ;;  %v681_v17 = vadd.f32 %v680_v14, %v1714_v3  ;;  %v682_v18 = vpop.f32.mrb[5].mxu1 }
 0x1d9   : > { %v609_v20 = vmax.f32 %v600_v11, %v605_v13  ;;  %v683_v21 = vadd.f32 %v682_v18, %v1714_v3 }
 0x1da   : > { %v1486_v22 = vpack.c.bf16 %v608_v16, %v606_v15  ;;  %v691_v27 = vmul.f32 0.01, %v681_v17 }
 0x1db   : > { %v686_v23 = vpop.f32.mrb[6].mxu1  ;;  %v1484_v26 = vpack.c.bf16 %v609_v20, %v607_v19  ;;  %v692_v30 = vmul.f32 0.01, %v683_v21 }
 0x1dc   : > { %v687_v28 = vadd.f32 %v686_v23, %v1718_v7  ;;  %v688_v29 = vpop.f32.mrb[7].mxu1  ;;  %v695_v35 = vmax.f32 %v681_v17, %v691_v27 }
 0x1dd   : > { %v689_v31 = vadd.f32 %v688_v29, %v1718_v7  ;;  %1485 = vmatprep.subr.bf16.mxu0 %v1484_v26  ;;  %v696_v39 = vmax.f32 %v683_v21, %v692_v30 }
 0x1de   : > { %v693_v32 = vmul.f32 0.01, %v687_v28  ;;  %1487 = vmatpush1.bf16.msra.mxu0 %v1486_v22 }
 0x1df   : > { %v694_v33 = vmul.f32 0.01, %v689_v31  ;;  %v769_v34 = vpop.f32.mrb[8].mxu1 }
 0x1e0   : > { %v697_v36 = vmax.f32 %v687_v28, %v693_v32  ;;  %v770_v37 = vadd.f32 %v769_v34, %v1714_v3  ;;  %v771_v38 = vpop.f32.mrb[9].mxu1 }
 0x1e1   : > { %v698_v40 = vmax.f32 %v689_v31, %v694_v33  ;;  %v772_v41 = vadd.f32 %v771_v38, %v1714_v3 }
 0x1e2   : > { %v1490_v42 = vpack.c.bf16 %v697_v36, %v695_v35  ;;  %v780_v45 = vmul.f32 0.01, %v770_v37 }
 0x1e3   : > { %v775_v43 = vpop.f32.mrb[10].mxu1  ;;  %v1488_v44 = vpack.c.bf16 %v698_v40, %v696_v39  ;;  %v781_v48 = vmul.f32 0.01, %v772_v41 }
 0x1e4   : > { %v776_v46 = vadd.f32 %v775_v43, %v1718_v7  ;;  %v777_v47 = vpop.f32.mrb[11].mxu1  ;;  %v784_v53 = vmax.f32 %v770_v37, %v780_v45 }
 0x1e5   : > { %v778_v49 = vadd.f32 %v777_v47, %v1718_v7  ;;  %1489 = vmatprep.subr.bf16.mxu0 %v1488_v44  ;;  %v785_v57 = vmax.f32 %v772_v41, %v781_v48 }
 0x1e6   : > { %v782_v50 = vmul.f32 0.01, %v776_v46  ;;  %1491 = vmatpush1.bf16.msra.mxu0 %v1490_v42 }
 0x1e7   : > { %v783_v51 = vmul.f32 0.01, %v778_v49  ;;  %v858_v52 = vpop.f32.mrb[12].mxu1 }
 0x1e8   : > { %v786_v54 = vmax.f32 %v776_v46, %v782_v50  ;;  %v859_v55 = vadd.f32 %v858_v52, %v1714_v3  ;;  %v860_v56 = vpop.f32.mrb[13].mxu1 }
 0x1e9   : > { %v787_v58 = vmax.f32 %v778_v49, %v783_v51  ;;  %v861_v59 = vadd.f32 %v860_v56, %v1714_v3 }
 0x1ea   : > { %v1494_v60 = vpack.c.bf16 %v786_v54, %v784_v53  ;;  %v869_v63 = vmul.f32 0.01, %v859_v55 }
 0x1eb   : > { %v864_v61 = vpop.f32.mrb[14].mxu1  ;;  %v1492_v62 = vpack.c.bf16 %v787_v58, %v785_v57  ;;  %v870_v4 = vmul.f32 0.01, %v861_v59 }
 0x1ec   : > { %v865_v1 = vadd.f32 %v864_v61, %v1718_v7  ;;  %v866_v2 = vpop.f32.mrb[15].mxu1  ;;  %v873_v8 = vmax.f32 %v859_v55, %v869_v63 }
 0x1ed   : > { %v867_v5 = vadd.f32 %v866_v2, %v1718_v7  ;;  %1493 = vmatprep.subr.bf16.mxu0 %v1492_v62  ;;  %v874_v11 = vmax.f32 %v861_v59, %v870_v4 }
 0x1ee   : > { %v871_v6 = vmul.f32 0.01, %v865_v1  ;;  %1495 = vmatpush1.bf16.msra.mxu0 %v1494_v60 }
 0x1ef   : > { %v872_v24 = vmul.f32 0.01, %v867_v5  ;;  %v947_v0 = vpop.f32.mrb[16].mxu1 }
 0x1f0   : > { %v875_v25 = vmax.f32 %v865_v1, %v871_v6  ;;  %v948_v9 = vadd.f32 %v947_v0, %v1714_v3  ;;  %v949_v10 = vpop.f32.mrb[17].mxu1 }
 0x1f1   : > { %v876_v12 = vmax.f32 %v867_v5, %v872_v24  ;;  %v950_v13 = vadd.f32 %v949_v10, %v1714_v3 }
 0x1f2   : > { %v1498_v14 = vpack.c.bf16 %v875_v25, %v873_v8  ;;  %v958_v17 = vmul.f32 0.01, %v948_v9 }
 0x1f3   : > { %v953_v15 = vpop.f32.mrb[18].mxu1  ;;  %v1496_v16 = vpack.c.bf16 %v876_v12, %v874_v11  ;;  %v959_v20 = vmul.f32 0.01, %v950_v13 }
 0x1f4   : > { %v954_v18 = vadd.f32 %v953_v15, %v1718_v7  ;;  %v955_v19 = vpop.f32.mrb[19].mxu1  ;;  %v962_v27 = vmax.f32 %v948_v9, %v958_v17 }
 0x1f5   : > { %v956_v21 = vadd.f32 %v955_v19, %v1718_v7  ;;  %1497 = vmatprep.subr.bf16.mxu0 %v1496_v16  ;;  %v963_v31 = vmax.f32 %v950_v13, %v959_v20 }
 0x1f6   : > { %v960_v22 = vmul.f32 0.01, %v954_v18  ;;  %1499 = vmatpush1.bf16.msra.mxu0 %v1498_v14 }
 0x1f7   : > { %v961_v23 = vmul.f32 0.01, %v956_v21  ;;  %v1036_v26 = vpop.f32.mrb[20].mxu1 }
 0x1f8   : > { %v964_v28 = vmax.f32 %v954_v18, %v960_v22  ;;  %v1037_v29 = vadd.f32 %v1036_v26, %v1714_v3  ;;  %v1038_v30 = vpop.f32.mrb[21].mxu1 }
 0x1f9   : > { %v965_v32 = vmax.f32 %v956_v21, %v961_v23  ;;  %v1039_v33 = vadd.f32 %v1038_v30, %v1714_v3  ;;  %v171_v21 = vld [vmem:[%s1762_s1 + $0x120] sm:$0xff] }
 0x1fa   : > { %v1502_v34 = vpack.c.bf16 %v964_v28, %v962_v27  ;;  %v1047_v37 = vmul.f32 0.01, %v1037_v29 }
 0x1fb   : > { %v1042_v35 = vpop.f32.mrb[22].mxu1  ;;  %v1500_v36 = vpack.c.bf16 %v965_v32, %v963_v31  ;;  %v1048_v40 = vmul.f32 0.01, %v1039_v33 }
 0x1fc   : > { %v1043_v38 = vadd.f32 %v1042_v35, %v1718_v7  ;;  %v1044_v39 = vpop.f32.mrb[23].mxu1  ;;  %v1051_v45 = vmax.f32 %v1037_v29, %v1047_v37 }
 0x1fd   : > { %v1045_v41 = vadd.f32 %v1044_v39, %v1718_v7  ;;  %1501 = vmatprep.subr.bf16.mxu0 %v1500_v36  ;;  %v1052_v49 = vmax.f32 %v1039_v33, %v1048_v40 }
 0x1fe   : > { %v1049_v42 = vmul.f32 0.01, %v1043_v38  ;;  %1503 = vmatpush1.bf16.msra.mxu0 %v1502_v34 }
 0x1ff   : > { %v1050_v43 = vmul.f32 0.01, %v1045_v41  ;;  %v1125_v44 = vpop.f32.mrb[24].mxu1 }
 0x200   : > { %v1053_v46 = vmax.f32 %v1043_v38, %v1049_v42  ;;  %v1126_v47 = vadd.f32 %v1125_v44, %v1714_v3  ;;  %v1127_v48 = vpop.f32.mrb[25].mxu1 }
 0x201   : > { %v1054_v50 = vmax.f32 %v1045_v41, %v1050_v43  ;;  %v1128_v51 = vadd.f32 %v1127_v48, %v1714_v3 }
 0x202   : > { %v1506_v52 = vpack.c.bf16 %v1053_v46, %v1051_v45  ;;  %v1136_v55 = vmul.f32 0.01, %v1126_v47 }
 0x203   : > { %v1131_v53 = vpop.f32.mrb[26].mxu1  ;;  %v1504_v54 = vpack.c.bf16 %v1054_v50, %v1052_v49  ;;  %v1137_v58 = vmul.f32 0.01, %v1128_v51 }
 0x204   : > { %v1132_v56 = vadd.f32 %v1131_v53, %v1718_v7  ;;  %v1133_v57 = vpop.f32.mrb[27].mxu1  ;;  %v1140_v63 = vmax.f32 %v1126_v47, %v1136_v55 }
 0x205   : > { %v1134_v59 = vadd.f32 %v1133_v57, %v1718_v7  ;;  %1505 = vmatprep.subr.bf16.mxu0 %v1504_v54  ;;  %v1141_v5 = vmax.f32 %v1128_v51, %v1137_v58 }
 0x206   : > { %v1138_v60 = vmul.f32 0.01, %v1132_v56  ;;  %1507 = vmatpush1.bf16.msra.mxu0 %v1506_v52 }
 0x207   : > { %v1139_v61 = vmul.f32 0.01, %v1134_v59  ;;  %v1214_v62 = vpop.f32.mrb[28].mxu1 }
 0x208   : > { %v1142_v1 = vmax.f32 %v1132_v56, %v1138_v60  ;;  %v1215_v2 = vadd.f32 %v1214_v62, %v1714_v3  ;;  %v1216_v4 = vpop.f32.mrb[29].mxu1 }
 0x209   : > { %v1143_v6 = vmax.f32 %v1134_v59, %v1139_v61  ;;  %v1217_v24 = vadd.f32 %v1216_v4, %v1714_v3 }
 0x20a   : > { %v1510_v0 = vpack.c.bf16 %v1142_v1, %v1140_v63  ;;  %v1225_v9 = vmul.f32 0.01, %v1215_v2 }
 0x20b   : > { %v1220_v8 = vpop.f32.mrb[30].mxu1  ;;  %v1508_v25 = vpack.c.bf16 %v1143_v6, %v1141_v5  ;;  %v1226_v12 = vmul.f32 0.01, %v1217_v24 }
 0x20c   : > { %v1221_v10 = vadd.f32 %v1220_v8, %v1718_v7  ;;  %v1222_v11 = vpop.f32.mrb[31].mxu1  ;;  %v1229_v16 = vmax.f32 %v1215_v2, %v1225_v9 }
 0x20d   : > { %v1223_v13 = vadd.f32 %v1222_v11, %v1718_v7  ;;  %1509 = vmatprep.subr.bf16.mxu0 %v1508_v25  ;;  %v1230_v18 = vmax.f32 %v1217_v24, %v1226_v12  ;;  %v1272_v7 = vpop.permute.xlu0 %1271 }
 0x20e   : > { %v1227_v14 = vmul.f32 0.01, %v1221_v10  ;;  %1511 = vmatpush1.bf16.msra.mxu0 %v1510_v0 }
 0x20f   : > { %v1228_v15 = vmul.f32 0.01, %v1223_v13 }
 0x210   : > { %v1231_v17 = vmax.f32 %v1221_v10, %v1227_v14 }
 0x211   : > { %v1232_v3 = vmax.f32 %v1223_v13, %v1228_v15 }
 0x212   : > { %v1514_v19 = vpack.c.bf16 %v1231_v17, %v1229_v16 }
 0x213   : > { %v1512_v20 = vpack.c.bf16 %v1232_v3, %v1230_v18 }
 0x215   : > { %1513 = vmatprep.subr.bf16.mxu0 %v1512_v20 }
 0x216   : > { %1515 = vmatpush1.bf16.msra.mxu0 %v1514_v19 }
 0x219   : > { %1339 = vmatmul.mubr.f32.vlgmr.msra.gmra.mrb[32].mxu0 %v171_v21 }
 0x2ec   : > { %v1340_v22 = vpop.f32.mrb[32].mxu0 }
 0x2ed   : > { %v1341_v23 = vadd.f32 %v1340_v22, %v1272_v7  ;;  %v1342_v26 = vpop.f32.mrb[33].mxu0 }
 0x2ee   : > { %v1343_v27 = vadd.f32 %v1342_v26, %v1272_v7 }
 0x2ef   : > { %1345 = vst [vmem:[%s148_s5] sm:$0xff] %v1341_v23 }
 0x2f0   : > { %1346 = vst [vmem:[%s148_s5 + $0x8] sm:$0xff] %v1343_v27 }
 0x2f1 PF: > { %s12_s9 = sadd.s32 1, %s1536_s9  }
 0x2f2   : > { %p9_p5 = scmp.ge.s32.totalorder %s12_s9, 4  }
 0x2f4   :  { %11 = sbr.rel (!%p9_p5) target bundleno = 1 (0x1), region = 58 }

</bundles_post_ra>
